<compile_context>
chip_gen: v5e
topology: v5e:2x2
jax: 0.10.0
libtpu: 0.0.40
codegen_flags: <defaults>
</compile_context>

<pallas_src>
import jax
import jax.numpy as jnp
from jax.experimental import pallas as pl
from jax.experimental.pallas import tpu as pltpu

LAYER_DIMS = [(20, 512), (512, 256), (256, 128), (128, 64), (64, 2)]
W5_PAD = 128           # final-layer output columns padded 2 -> 128 (lane-dense matmul)
MAX_BATCH_TILE = 1024  # cap on rows per grid step (multiple of 256)


def _round_up(x, m):
    return ((x + m - 1) // m) * m


def _choose_batch_tile(batch):
    """Big tiles (amortize ~0.35us per-grid-step overhead) but guarantee >= 2 grid
    steps for large batches so v7x's second TensorCore gets work; tiny batches use
    a single minimally padded tile."""
    if batch <= 256:
        return _round_up(max(batch, 1), 8)
    return min(MAX_BATCH_TILE, _round_up((batch + 1) // 2, 256))


def shieldnet_kernel(x_ref,
                     w1_ref, b1_ref,
                     w2_ref, b2_ref,
                     w3_ref, b3_ref,
                     w4_ref, b4_ref,
                     w5_ref, b5_ref,
                     o_ref):
    bf16 = jnp.bfloat16

    def dense(h, w_ref, b_ref):
        # bf16 MXU matmul with f32 accumulation; bias add in f32.
        return jnp.dot(h, w_ref[...], preferred_element_type=jnp.float32) + b_ref[...]

    h = x_ref[...]                                             # (tile, 20) bf16
    h = jnp.maximum(dense(h, w1_ref, b1_ref).astype(bf16), 0)  # Linear(20,512)  + ReLU
    h = jnp.maximum(dense(h, w2_ref, b2_ref).astype(bf16), 0)  # Linear(512,256) + ReLU
    h = jnp.tanh(dense(h, w3_ref, b3_ref).astype(bf16))        # Linear(256,128) + Tanh
    h = jnp.tanh(dense(h, w4_ref, b4_ref).astype(bf16))        # Linear(128,64)  + Tanh
    z = dense(h, w5_ref, b5_ref)                               # Linear(64,2) padded to 128 cols, f32

    # LogSoftmax(dim=1) over the 2 real logits only (cols 0,1), fully elementwise
    # (VPU max/sub + EUP exp/log); no cross-lane reduce, no full-width subtract.
    z0 = z[:, 0:1]
    z1 = z[:, 1:2]
    m = jnp.maximum(z0, z1)
    lse = m + jnp.log(jnp.exp(z0 - m) + jnp.exp(z1 - m))
    o_ref[...] = (z[:, 0:2] - lse).astype(o_ref.dtype)         # (tile, 2)


def shieldnet_forward(x, params):
    """x: (B, 20). params: list of (W, b) with W stored as (in, out)."""
    B = x.shape[0]
    tile = _choose_batch_tile(B)
    B_pad = _round_up(B, tile)
    grid = B_pad // tile

    xb = x.astype(jnp.bfloat16)
    if B_pad != B:                       # pad only when actually needed
        xb = jnp.pad(xb, ((0, B_pad - B), (0, 0)))

    flat_args = [xb]
    in_specs = [pl.BlockSpec((tile, LAYER_DIMS[0][0]), lambda i: (i, 0))]

    n_layers = len(params)
    for li, (w, b) in enumerate(params):
        w = w.astype(jnp.bfloat16)
        b = b.astype(jnp.float32).reshape(1, -1)
        if li == n_layers - 1:
            # Zero-pad the final layer's 2 outputs to 128 lanes for a lane-dense matmul.
            w = jnp.pad(w, ((0, 0), (0, W5_PAD - w.shape[1])))
            b = jnp.pad(b, ((0, 0), (0, W5_PAD - b.shape[1])))
        flat_args += [w, b]
        # Constant index_map -> weights/biases DMA'd HBM->VMEM once, stay resident.
        in_specs += [pl.BlockSpec(w.shape, lambda i: (0, 0)),
                     pl.BlockSpec(b.shape, lambda i: (0, 0))]

    flops = 2 * B_pad * sum(fi * fo for fi, fo in LAYER_DIMS)
    transcendentals = B_pad * (128 + 64 + 2 + 1)   # tanh + tanh + softmax exps + log
    bytes_accessed = (sum(int(a.size) * a.dtype.itemsize for a in flat_args)
                      + B_pad * 2 * 4)

    out = pl.pallas_call(
        shieldnet_kernel,
        grid=(grid,),
        out_shape=jax.ShapeDtypeStruct((B_pad, 2), jnp.float32),
        in_specs=in_specs,
        out_specs=pl.BlockSpec((tile, 2), lambda i: (i, 0)),
        compiler_params=pltpu.CompilerParams(
            dimension_semantics=("parallel",)),
        cost_estimate=pl.CostEstimate(
            flops=flops,
            transcendentals=transcendentals,
            bytes_accessed=bytes_accessed),
    )(*flat_args)

    return out[:B]


def init_params(key):
    """Deterministic synthetic parameters matching the torch module's shapes."""
    params = []
    for (fan_in, fan_out) in LAYER_DIMS:
        key, kw, kb = jax.random.split(key, 3)
        scale = 1.0 / jnp.sqrt(jnp.float32(fan_in))
        w = jax.random.uniform(kw, (fan_in, fan_out), jnp.float32, -scale, scale)
        b = jax.random.uniform(kb, (fan_out,), jnp.float32, -scale, scale)
        params.append((w, b))
    return params


def reference_forward(x, params):
    """Pure-JAX reference mimicking the kernel math (bf16 matmul operands and
    bf16 activations, f32 accumulation, f32 log-softmax)."""
    h = x.astype(jnp.bfloat16)
    acts = [jax.nn.relu, jax.nn.relu, jnp.tanh, jnp.tanh, None]
    for (w, b), act in zip(params, acts):
        z = jnp.dot(h, w.astype(jnp.bfloat16),
                    preferred_element_type=jnp.float32) + b.astype(jnp.float32)
        h = act(z.astype(jnp.bfloat16)) if act is not None else z
    return jax.nn.log_softmax(h, axis=1)


if __name__ == "__main__":
    key = jax.random.PRNGKey(0)
    key, kx = jax.random.split(key)

    B = 8
    x = jax.random.normal(kx, (B, 20), jnp.float32)
    params = init_params(key)

    out = jax.block_until_ready(shieldnet_forward(x, params))
    ref = reference_forward(x, params)

    assert out.shape == (B, 2), out.shape
    err = float(jnp.max(jnp.abs(out - ref)))
    assert err < 2e-2, f"mismatch vs reference: max abs err = {err}"

    print("KERNEL_OK")
</pallas_src>

<mosaic_0001>
module attributes {stable_mosaic.version = 11 : i64} {
  func.func @shieldnet_kernel(%arg0: i32, %arg1: memref<8x20xbf16, #tpu.memory_space<vmem>>, %arg2: memref<20x512xbf16, #tpu.memory_space<vmem>>, %arg3: memref<1x512xf32, #tpu.memory_space<vmem>>, %arg4: memref<512x256xbf16, #tpu.memory_space<vmem>>, %arg5: memref<1x256xf32, #tpu.memory_space<vmem>>, %arg6: memref<256x128xbf16, #tpu.memory_space<vmem>>, %arg7: memref<1x128xf32, #tpu.memory_space<vmem>>, %arg8: memref<128x64xbf16, #tpu.memory_space<vmem>>, %arg9: memref<1x64xf32, #tpu.memory_space<vmem>>, %arg10: memref<64x128xbf16, #tpu.memory_space<vmem>>, %arg11: memref<1x128xf32, #tpu.memory_space<vmem>>, %arg12: memref<8x2xf32, #tpu.memory_space<vmem>>) attributes {dimension_semantics = [#tpu.dimension_semantics<parallel>], iteration_bounds = array<i64: 1>, scalar_prefetch = 0 : i64, scratch_operands = 0 : i64, tpu.core_type = #tpu.core_type<tc>, window_params = [{transform_indices = @transform_0, window_bounds = array<i64: 8, 20>}, {pipeline_mode = #tpu.pipeline_mode<synchronous>, transform_indices = @transform_1, window_bounds = array<i64: 20, 512>}, {pipeline_mode = #tpu.pipeline_mode<synchronous>, transform_indices = @transform_2, window_bounds = array<i64: 1, 512>}, {pipeline_mode = #tpu.pipeline_mode<synchronous>, transform_indices = @transform_3, window_bounds = array<i64: 512, 256>}, {pipeline_mode = #tpu.pipeline_mode<synchronous>, transform_indices = @transform_4, window_bounds = array<i64: 1, 256>}, {pipeline_mode = #tpu.pipeline_mode<synchronous>, transform_indices = @transform_5, window_bounds = array<i64: 256, 128>}, {pipeline_mode = #tpu.pipeline_mode<synchronous>, transform_indices = @transform_6, window_bounds = array<i64: 1, 128>}, {pipeline_mode = #tpu.pipeline_mode<synchronous>, transform_indices = @transform_7, window_bounds = array<i64: 128, 64>}, {pipeline_mode = #tpu.pipeline_mode<synchronous>, transform_indices = @transform_8, window_bounds = array<i64: 1, 64>}, {pipeline_mode = #tpu.pipeline_mode<synchronous>, transform_indices = @transform_9, window_bounds = array<i64: 64, 128>}, {pipeline_mode = #tpu.pipeline_mode<synchronous>, transform_indices = @transform_10, window_bounds = array<i64: 1, 128>}, {transform_indices = @transform_11, window_bounds = array<i64: 8, 2>}]} {
    %c0 = arith.constant 0 : index
    %c0_0 = arith.constant 0 : index
    %0 = vector.load %arg1[%c0, %c0_0] : memref<8x20xbf16, #tpu.memory_space<vmem>>, vector<8x20xbf16>
    %c0_1 = arith.constant 0 : index
    %c0_2 = arith.constant 0 : index
    %1 = vector.load %arg2[%c0_1, %c0_2] : memref<20x512xbf16, #tpu.memory_space<vmem>>, vector<20x512xbf16>
    %cst = arith.constant dense<0.000000e+00> : vector<8x512xf32>
    %2 = tpu.matmul %0, %1, %cst {dimension_numbers = #tpu.dot_dimension_numbers<[1], [0], [0], [1], [0, 0, 1, 1], [], []>} : vector<8x20xbf16>, vector<20x512xbf16>, vector<8x512xf32> -> vector<8x512xf32>
    %c0_3 = arith.constant 0 : index
    %c0_4 = arith.constant 0 : index
    %3 = vector.load %arg3[%c0_3, %c0_4] : memref<1x512xf32, #tpu.memory_space<vmem>>, vector<1x512xf32>
    %4 = vector.broadcast %3 : vector<1x512xf32> to vector<8x512xf32>
    %5 = arith.addf %2, %4 : vector<8x512xf32>
    %6 = arith.truncf %5 : vector<8x512xf32> to vector<8x512xbf16>
    %cst_5 = arith.constant 0.000000e+00 : bf16
    %7 = vector.broadcast %cst_5 : bf16 to vector<8x512xbf16>
    %8 = arith.maximumf %6, %7 : vector<8x512xbf16>
    %c0_6 = arith.constant 0 : index
    %c0_7 = arith.constant 0 : index
    %9 = vector.load %arg4[%c0_6, %c0_7] : memref<512x256xbf16, #tpu.memory_space<vmem>>, vector<512x256xbf16>
    %cst_8 = arith.constant dense<0.000000e+00> : vector<8x256xf32>
    %10 = tpu.matmul %8, %9, %cst_8 {dimension_numbers = #tpu.dot_dimension_numbers<[1], [0], [0], [1], [0, 0, 1, 1], [], []>} : vector<8x512xbf16>, vector<512x256xbf16>, vector<8x256xf32> -> vector<8x256xf32>
    %c0_9 = arith.constant 0 : index
    %c0_10 = arith.constant 0 : index
    %11 = vector.load %arg5[%c0_9, %c0_10] : memref<1x256xf32, #tpu.memory_space<vmem>>, vector<1x256xf32>
    %12 = vector.broadcast %11 : vector<1x256xf32> to vector<8x256xf32>
    %13 = arith.addf %10, %12 : vector<8x256xf32>
    %14 = arith.truncf %13 : vector<8x256xf32> to vector<8x256xbf16>
    %cst_11 = arith.constant 0.000000e+00 : bf16
    %15 = vector.broadcast %cst_11 : bf16 to vector<8x256xbf16>
    %16 = arith.maximumf %14, %15 : vector<8x256xbf16>
    %c0_12 = arith.constant 0 : index
    %c0_13 = arith.constant 0 : index
    %17 = vector.load %arg6[%c0_12, %c0_13] : memref<256x128xbf16, #tpu.memory_space<vmem>>, vector<256x128xbf16>
    %cst_14 = arith.constant dense<0.000000e+00> : vector<8x128xf32>
    %18 = tpu.matmul %16, %17, %cst_14 {dimension_numbers = #tpu.dot_dimension_numbers<[1], [0], [0], [1], [0, 0, 1, 1], [], []>} : vector<8x256xbf16>, vector<256x128xbf16>, vector<8x128xf32> -> vector<8x128xf32>
    %c0_15 = arith.constant 0 : index
    %c0_16 = arith.constant 0 : index
    %19 = vector.load %arg7[%c0_15, %c0_16] : memref<1x128xf32, #tpu.memory_space<vmem>>, vector<1x128xf32>
    %20 = vector.broadcast %19 : vector<1x128xf32> to vector<8x128xf32>
    %21 = arith.addf %18, %20 : vector<8x128xf32>
    %22 = arith.truncf %21 : vector<8x128xf32> to vector<8x128xbf16>
    %23 = math.tanh %22 : vector<8x128xbf16>
    %c0_17 = arith.constant 0 : index
    %c0_18 = arith.constant 0 : index
    %24 = vector.load %arg8[%c0_17, %c0_18] : memref<128x64xbf16, #tpu.memory_space<vmem>>, vector<128x64xbf16>
    %cst_19 = arith.constant dense<0.000000e+00> : vector<8x64xf32>
    %25 = tpu.matmul %23, %24, %cst_19 {dimension_numbers = #tpu.dot_dimension_numbers<[1], [0], [0], [1], [0, 0, 1, 1], [], []>} : vector<8x128xbf16>, vector<128x64xbf16>, vector<8x64xf32> -> vector<8x64xf32>
    %c0_20 = arith.constant 0 : index
    %c0_21 = arith.constant 0 : index
    %26 = vector.load %arg9[%c0_20, %c0_21] : memref<1x64xf32, #tpu.memory_space<vmem>>, vector<1x64xf32>
    %27 = vector.broadcast %26 : vector<1x64xf32> to vector<8x64xf32>
    %28 = arith.addf %25, %27 : vector<8x64xf32>
    %29 = arith.truncf %28 : vector<8x64xf32> to vector<8x64xbf16>
    %30 = math.tanh %29 : vector<8x64xbf16>
    %c0_22 = arith.constant 0 : index
    %c0_23 = arith.constant 0 : index
    %31 = vector.load %arg10[%c0_22, %c0_23] : memref<64x128xbf16, #tpu.memory_space<vmem>>, vector<64x128xbf16>
    %cst_24 = arith.constant dense<0.000000e+00> : vector<8x128xf32>
    %32 = tpu.matmul %30, %31, %cst_24 {dimension_numbers = #tpu.dot_dimension_numbers<[1], [0], [0], [1], [0, 0, 1, 1], [], []>} : vector<8x64xbf16>, vector<64x128xbf16>, vector<8x128xf32> -> vector<8x128xf32>
    %c0_25 = arith.constant 0 : index
    %c0_26 = arith.constant 0 : index
    %33 = vector.load %arg11[%c0_25, %c0_26] : memref<1x128xf32, #tpu.memory_space<vmem>>, vector<1x128xf32>
    %34 = vector.broadcast %33 : vector<1x128xf32> to vector<8x128xf32>
    %35 = arith.addf %32, %34 : vector<8x128xf32>
    %36 = vector.extract_strided_slice %35 {offsets = [0, 0], sizes = [8, 1], strides = [1, 1]} : vector<8x128xf32> to vector<8x1xf32>
    %37 = vector.extract_strided_slice %35 {offsets = [0, 1], sizes = [8, 1], strides = [1, 1]} : vector<8x128xf32> to vector<8x1xf32>
    %38 = arith.maximumf %36, %37 : vector<8x1xf32>
    %39 = arith.subf %36, %38 : vector<8x1xf32>
    %40 = math.exp %39 : vector<8x1xf32>
    %41 = arith.subf %37, %38 : vector<8x1xf32>
    %42 = math.exp %41 : vector<8x1xf32>
    %43 = arith.addf %40, %42 : vector<8x1xf32>
    %44 = math.log %43 : vector<8x1xf32>
    %45 = arith.addf %38, %44 : vector<8x1xf32>
    %46 = vector.extract_strided_slice %35 {offsets = [0, 0], sizes = [8, 2], strides = [1, 1]} : vector<8x128xf32> to vector<8x2xf32>
    %47 = vector.broadcast %45 : vector<8x1xf32> to vector<8x2xf32>
    %48 = arith.subf %46, %47 : vector<8x2xf32>
    %c0_27 = arith.constant 0 : index
    %c0_28 = arith.constant 0 : index
    %49 = vector.load %arg12[%c0_27, %c0_28] : memref<8x2xf32, #tpu.memory_space<vmem>>, vector<8x2xf32>
    tpu.vector_store %arg12[%c0_27, %c0_28], %48 {strides = array<i32>} : memref<8x2xf32, #tpu.memory_space<vmem>>, vector<8x2xf32>,
    return
  }
  func.func @transform_0(%arg0: i32) -> (i32, i32) {
    %c0_i32 = arith.constant 0 : i32
    %c0_i32_0 = arith.constant 0 : i32
    return %arg0, %c0_i32 : i32, i32
  }
  func.func @transform_1(%arg0: i32) -> (i32, i32) {
    %c0_i32 = arith.constant 0 : i32
    %c0_i32_0 = arith.constant 0 : i32
    %c0_i32_1 = arith.constant 0 : i32
    return %c0_i32, %c0_i32_0 : i32, i32
  }
  func.func @transform_2(%arg0: i32) -> (i32, i32) {
    %c0_i32 = arith.constant 0 : i32
    %c0_i32_0 = arith.constant 0 : i32
    %c0_i32_1 = arith.constant 0 : i32
    return %c0_i32, %c0_i32_0 : i32, i32
  }
  func.func @transform_3(%arg0: i32) -> (i32, i32) {
    %c0_i32 = arith.constant 0 : i32
    %c0_i32_0 = arith.constant 0 : i32
    %c0_i32_1 = arith.constant 0 : i32
    return %c0_i32, %c0_i32_0 : i32, i32
  }
  func.func @transform_4(%arg0: i32) -> (i32, i32) {
    %c0_i32 = arith.constant 0 : i32
    %c0_i32_0 = arith.constant 0 : i32
    %c0_i32_1 = arith.constant 0 : i32
    return %c0_i32, %c0_i32_0 : i32, i32
  }
  func.func @transform_5(%arg0: i32) -> (i32, i32) {
    %c0_i32 = arith.constant 0 : i32
    %c0_i32_0 = arith.constant 0 : i32
    %c0_i32_1 = arith.constant 0 : i32
    return %c0_i32, %c0_i32_0 : i32, i32
  }
  func.func @transform_6(%arg0: i32) -> (i32, i32) {
    %c0_i32 = arith.constant 0 : i32
    %c0_i32_0 = arith.constant 0 : i32
    %c0_i32_1 = arith.constant 0 : i32
    return %c0_i32, %c0_i32_0 : i32, i32
  }
  func.func @transform_7(%arg0: i32) -> (i32, i32) {
    %c0_i32 = arith.constant 0 : i32
    %c0_i32_0 = arith.constant 0 : i32
    %c0_i32_1 = arith.constant 0 : i32
    return %c0_i32, %c0_i32_0 : i32, i32
  }
  func.func @transform_8(%arg0: i32) -> (i32, i32) {
    %c0_i32 = arith.constant 0 : i32
    %c0_i32_0 = arith.constant 0 : i32
    %c0_i32_1 = arith.constant 0 : i32
    return %c0_i32, %c0_i32_0 : i32, i32
  }
  func.func @transform_9(%arg0: i32) -> (i32, i32) {
    %c0_i32 = arith.constant 0 : i32
    %c0_i32_0 = arith.constant 0 : i32
    %c0_i32_1 = arith.constant 0 : i32
    return %c0_i32, %c0_i32_0 : i32, i32
  }
  func.func @transform_10(%arg0: i32) -> (i32, i32) {
    %c0_i32 = arith.constant 0 : i32
    %c0_i32_0 = arith.constant 0 : i32
    %c0_i32_1 = arith.constant 0 : i32
    return %c0_i32, %c0_i32_0 : i32, i32
  }
  func.func @transform_11(%arg0: i32) -> (i32, i32) {
    %c0_i32 = arith.constant 0 : i32
    %c0_i32_0 = arith.constant 0 : i32
    return %arg0, %c0_i32 : i32, i32
  }
}

</mosaic_0001>

<bundles_post_ra>
// kernel: tpu_custom_call.1
= control target key start
LH: loop header
LB: loop body
LE: loop exit
PB: predicated region body
PF: predicated region fallthrough
CT: control target
= control target key end

     0   :  { %16 = vsyncpa [#allocation3], 0  ;;  %s1770_s0 = inlined_call_operand.vmem [shape: bf16[8,20], index: 0, kind: input, shape index: {}]   ;;  %s1771_s1 = inlined_call_operand.vmem [shape: bf16[20,512], index: 1, kind: input, shape index: {}]   ;;  %s1772_s2 = inlined_call_operand.vmem [shape: f32[1,512], index: 2, kind: input, shape index: {}]   ;;  %s1773_s3 = inlined_call_operand.hbm [shape: bf16[512,256], index: 3, kind: input, shape index: {}]   ;;  %s1774_s4 = inlined_call_operand.vmem [shape: f32[1,256], index: 4, kind: input, shape index: {}]   ;;  %s1775_s5 = inlined_call_operand.hbm [shape: bf16[256,128], index: 5, kind: input, shape index: {}]   ;;  %s1776_s6 = inlined_call_operand.vmem [shape: f32[1,128], index: 6, kind: input, shape index: {}]   ;;  %s1777_s7 = inlined_call_operand.vmem [shape: bf16[128,64], index: 7, kind: input, shape index: {}]   ;;  %s1778_s8 = inlined_call_operand.vmem [shape: f32[1,64], index: 8, kind: input, shape index: {}]   ;;  %s1779_s9 = inlined_call_operand.vmem [shape: bf16[64,128], index: 9, kind: input, shape index: {}]   ;;  %s1780_s10 = inlined_call_operand.vmem [shape: f32[1,128], index: 10, kind: input, shape index: {}]   ;;  %s1781_s11 = inlined_call_operand.vmem [shape: f32[8,2], index: 11, kind: output, shape index: {}]  }
   0x1   :  { %s28_s19 = sshll.u32 %s1773_s3, 4  ;;  %s29_s19 = int_to_ptr.hbm [resolvable:$true] %s28_s19 }
   0x2   :  { %17 = vsyncpa [#allocation5], 0  ;;  %s1600_s20 = smov [#allocation2]   ;;  %s43_s24 = sshll.u32 %s1775_s5, 4  ;;  %s44_s24 = int_to_ptr.hbm [resolvable:$true] %s43_s24 }
   0x3   :  { %s30_s21 = sshll.u32 %s1600_s20, 4  ;;  %s1601_s25 = smov 128   ;;  %s31_s21 = int_to_ptr.vmem [resolvable:$true] %s30_s21 }
   0x4   :  { %s1602_s26 = smov 8   ;;  %s1603_s27 = smov [#allocation4]  }
   0x5   :  { %36 = dma.hbm_to_vmem [thread:$0]  %s29_s19, 8192, %s31_s21, [#allocation3], %s1601_s25, %s1601_s25, %s1602_s26  }
   0x6   :  { %s45_s28 = sshll.u32 %s1603_s27, 4  ;;  %s1604_s29 = smov 64   ;;  %s46_s28 = int_to_ptr.vmem [resolvable:$true] %s45_s28 }
   0x7   :  { %s1605_s30 = smov 4  }
   0x8   :  { %51 = dma.hbm_to_vmem [thread:$0]  %s44_s24, 2048, %s46_s28, [#allocation5], %s1604_s29, %s1604_s29, %s1605_s30  }
   0x9   :  { %1596 = dma.done.wait [#allocation3], 8192  }
   0xa   :  { %1597 = vsyncadd [#allocation3], 4294959104 }
   0xb   :  { %1598 = dma.done.wait [#allocation5], 2048  }
   0xc   :  { %1599 = vsyncadd [#allocation5], 4294965248  ;;  %v76_v0 = vld [vmem:[%s1771_s1 + $0x20] sm:$0x33]  ;;  %vm122_vm0 = vcmask 1041408   ;;  %vm118_vm1 = vcmask 162816  }
   0xd   :  { %v77_v1 = vld [vmem:[%s1771_s1 + $0x28] sm:$0x33]  ;;  %v102_v2 = vunpack.c.l.b16 %v76_v0  ;;  %v103_v3 = vunpack.c.h.b16 %v76_v0  ;;  %v1041_v6 = vld [vmem:[%s1771_s1] sm:$0xf]  ;;  %v1430_v7 = vld [vmem:[%s1771_s1 + $0xc] sm:$0xf0] }
   0xe   :  { %v104_v4 = vunpack.c.l.b16 %v77_v1  ;;  %v105_v5 = vunpack.c.h.b16 %v77_v1  ;;  %v1428_v8 = vld [vmem:[%s1771_s1 + $0x4] sm:$0xf]  ;;  %v1043_v9 = vld [vmem:[%s1771_s1 + $0x10] sm:$0xf0]  ;;  %v1049_v10 = vld [vmem:[%s1771_s1 + $0x8] sm:$0xf]  ;;  %v1042_v26 = vor.u32 %v1430_v7, %v1041_v6 }
   0xf   :  { %v110_v11 = vpack.c.b16 %v102_v2, %v102_v2  ;;  %v111_v12 = vpack.c.b16 %v103_v3, %v103_v3  ;;  %v1431_v15 = vld [vmem:[%s1771_s1 + $0x14] sm:$0xf0]  ;;  %v1429_v16 = vld [vmem:[%s1771_s1 + $0xc] sm:$0xf]  ;;  %v1051_v17 = vld [vmem:[%s1771_s1 + $0x18] sm:$0xf0]  ;;  %v1046_v27 = vor.u32 %v1428_v8, %v1043_v9 }
  0x10   :  { %v112_v13 = vpack.c.b16 %v104_v4, %v104_v4  ;;  %v113_v14 = vpack.c.b16 %v105_v5, %v105_v5  ;;  %v1117_v18 = vld [vmem:[#allocation2 + $0x70] sm:$0xf]  ;;  %v1447_v19 = vld [vmem:[#allocation2 + $0x74] sm:$0xf0]  ;;  %v1050_v28 = vor.u32 %v1431_v15, %v1049_v10  ;;  %v1054_v29 = vor.u32 %v1429_v16, %v1051_v17  ;;  %v1109_v30 = vld [vmem:[#allocation2 + $0x60] sm:$0xf] }
  0x11   :  { %v1181_v20 = vld [vmem:[#allocation2 + $0xf0] sm:$0xf]  ;;  %v124_v21 = vsel %vm122_vm0, %v110_v11, 0  ;;  %v127_v22 = vsel %vm122_vm0, %v111_v12, 0  ;;  %v1463_v25 = vld [vmem:[#allocation2 + $0xf4] sm:$0xf0]  ;;  %v1118_v32 = vor.u32 %v1447_v19, %v1117_v18 }
  0x12   :  { %v130_v23 = vsel %vm122_vm0, %v112_v13, 0  ;;  %v133_v24 = vsel %vm122_vm0, %v113_v14, 0  ;;  %141 = vmatpush.bf16.msra.mxu0 %v124_v21  ;;  %154 = vmatpush.bf16.msra.mxu1 %v127_v22  ;;  %v1245_v31 = vld [vmem:[#allocation2 + $0x170] sm:$0xf]  ;;  %v1182_v33 = vor.u32 %v1463_v25, %v1181_v20  ;;  %v1479_v34 = vld [vmem:[#allocation2 + $0x174] sm:$0xf0] }
  0x13   :  { %167 = vmatpush.bf16.msra.mxu2 %v130_v23  ;;  %180 = vmatpush.bf16.msra.mxu3 %v133_v24  ;;  %v1309_v35 = vld [vmem:[#allocation2 + $0x1f0] sm:$0xf]  ;;  %v1495_v36 = vld [vmem:[#allocation2 + $0x1f4] sm:$0xf0]  ;;  %v1445_v37 = vld [vmem:[#allocation2 + $0x64] sm:$0xf0]  ;;  %v1246_v41 = vor.u32 %v1479_v34, %v1245_v31 }
  0x14   :  { %v1173_v38 = vld [vmem:[#allocation2 + $0xe0] sm:$0xf]  ;;  %v1461_v39 = vld [vmem:[#allocation2 + $0xe4] sm:$0xf0]  ;;  %v1310_v42 = vor.u32 %v1495_v36, %v1309_v35  ;;  %v1101_v43 = vld [vmem:[#allocation2 + $0x50] sm:$0xf]  ;;  %v1110_v45 = vor.u32 %v1445_v37, %v1109_v30 }
  0x15   :  { %v71_v40 = vld [vmem:[%s1770_s0] sm:$0xf]  ;;  %v1174_v46 = vor.u32 %v1461_v39, %v1173_v38  ;;  %v1477_v47 = vld [vmem:[#allocation2 + $0x164] sm:$0xf0]  ;;  %v1443_v50 = vld [vmem:[#allocation2 + $0x54] sm:$0xf0] }
  0x16   :  { %142 = vmatpush.bf16.msra.mxu0 %v1042_v26  ;;  %155 = vmatpush.bf16.msra.mxu1 %v1046_v27  ;;  %v1237_v44 = vld [vmem:[#allocation2 + $0x160] sm:$0xf]  ;;  %v1493_v49 = vld [vmem:[#allocation2 + $0x1e4] sm:$0xf0]  ;;  %v1165_v51 = vld [vmem:[#allocation2 + $0xd0] sm:$0xf]  ;;  %v1102_v57 = vor.u32 %v1443_v50, %v1101_v43 }
  0x17   :  { %168 = vmatpush.bf16.msra.mxu2 %v1050_v28  ;;  %181 = vmatpush.bf16.msra.mxu3 %v1054_v29  ;;  %v1301_v48 = vld [vmem:[#allocation2 + $0x1e0] sm:$0xf]  ;;  %v1459_v52 = vld [vmem:[#allocation2 + $0xd4] sm:$0xf0]  ;;  %v1238_v53 = vor.u32 %v1477_v47, %v1237_v44  ;;  %v1229_v56 = vld [vmem:[#allocation2 + $0x150] sm:$0xf] }
  0x18   :  { %v1302_v54 = vor.u32 %v1493_v49, %v1301_v48  ;;  %v1093_v55 = vld [vmem:[#allocation2 + $0x40] sm:$0xf]  ;;  %v1166_v58 = vor.u32 %v1459_v52, %v1165_v51  ;;  %v1475_v59 = vld [vmem:[#allocation2 + $0x154] sm:$0xf0]  ;;  %v1293_v60 = vld [vmem:[#allocation2 + $0x1d0] sm:$0xf] }
  0x19   :  { %1055 = vmatmul.msk.bf16.vlgmr.msra.gmra.mxu0 %vm118_vm1, %v71_v40  ;;  %1056 = vmatmul.msk.bf16.vlgmr.msra.gmra.mxu1 %vm118_vm1, %v71_v40  ;;  %v1491_v61 = vld [vmem:[#allocation2 + $0x1d4] sm:$0xf0]  ;;  %v1441_v62 = vld [vmem:[#allocation2 + $0x44] sm:$0xf0]  ;;  %v1157_v63 = vld [vmem:[#allocation2 + $0xc0] sm:$0xf]  ;;  %v1230_v1 = vor.u32 %v1475_v59, %v1229_v56 }
  0x1a   :  { %591 = vmatpush.bf16.msrb.mxu0 %v1118_v32  ;;  %604 = vmatpush.bf16.msrb.mxu1 %v1182_v33  ;;  %v1457_v0 = vld [vmem:[#allocation2 + $0xc4] sm:$0xf0]  ;;  %v1294_v2 = vor.u32 %v1491_v61, %v1293_v60  ;;  %v1085_v3 = vld [vmem:[#allocation2 + $0x30] sm:$0xf]  ;;  %v1221_v4 = vld [vmem:[#allocation2 + $0x140] sm:$0xf]  ;;  %v1094_v5 = vor.u32 %v1441_v62, %v1093_v55 }
  0x1b   :  { %1057 = vmatmul.msk.bf16.vlgmr.msra.gmra.mxu2 %vm118_vm1, %v71_v40  ;;  %1058 = vmatmul.msk.bf16.vlgmr.msra.gmra.mxu3 %vm118_vm1, %v71_v40  ;;  %v1158_v6 = vor.u32 %v1457_v0, %v1157_v63  ;;  %v1473_v7 = vld [vmem:[#allocation2 + $0x144] sm:$0xf0]  ;;  %v1285_v8 = vld [vmem:[#allocation2 + $0x1c0] sm:$0xf]  ;;  %v1439_v10 = vld [vmem:[#allocation2 + $0x34] sm:$0xf0] }
  0x1c   :  { %617 = vmatpush.bf16.msrb.mxu2 %v1246_v41  ;;  %630 = vmatpush.bf16.msrb.mxu3 %v1310_v42  ;;  %v1489_v9 = vld [vmem:[#allocation2 + $0x1c4] sm:$0xf0]  ;;  %v1149_v11 = vld [vmem:[#allocation2 + $0xb0] sm:$0xf]  ;;  %v1455_v12 = vld [vmem:[#allocation2 + $0xb4] sm:$0xf0]  ;;  %v1222_v13 = vor.u32 %v1473_v7, %v1221_v4  ;;  %v1086_v17 = vor.u32 %v1439_v10, %v1085_v3 }
  0x1d   :  { %v1286_v14 = vor.u32 %v1489_v9, %v1285_v8  ;;  %v1077_v15 = vld [vmem:[#allocation2 + $0x20] sm:$0xf]  ;;  %v1213_v16 = vld [vmem:[#allocation2 + $0x130] sm:$0xf]  ;;  %v1150_v18 = vor.u32 %v1455_v12, %v1149_v11  ;;  %v1471_v19 = vld [vmem:[#allocation2 + $0x134] sm:$0xf0] }
  0x1e   :  { %592 = vmatpush.bf16.msrb.mxu0 %v1110_v45  ;;  %605 = vmatpush.bf16.msrb.mxu1 %v1174_v46  ;;  %v1277_v20 = vld [vmem:[#allocation2 + $0x1b0] sm:$0xf]  ;;  %v1487_v21 = vld [vmem:[#allocation2 + $0x1b4] sm:$0xf0]  ;;  %v1437_v22 = vld [vmem:[#allocation2 + $0x24] sm:$0xf0]  ;;  %v1214_v25 = vor.u32 %v1471_v19, %v1213_v16 }
  0x1f   :  { %v1141_v23 = vld [vmem:[#allocation2 + $0xa0] sm:$0xf]  ;;  %v1453_v24 = vld [vmem:[#allocation2 + $0xa4] sm:$0xf0]  ;;  %v1278_v26 = vor.u32 %v1487_v21, %v1277_v20  ;;  %v1069_v27 = vld [vmem:[#allocation2 + $0x10] sm:$0xf]  ;;  %v1078_v29 = vor.u32 %v1437_v22, %v1077_v15 }
  0x20   :  { %618 = vmatpush.bf16.msrb.mxu2 %v1238_v53  ;;  %631 = vmatpush.bf16.msrb.mxu3 %v1302_v54  ;;  %v1205_v28 = vld [vmem:[#allocation2 + $0x120] sm:$0xf]  ;;  %v1142_v30 = vor.u32 %v1453_v24, %v1141_v23  ;;  %v1469_v31 = vld [vmem:[#allocation2 + $0x124] sm:$0xf0]  ;;  %v1435_v34 = vld [vmem:[#allocation2 + $0x14] sm:$0xf0] }
  0x21   :  { %v1269_v32 = vld [vmem:[#allocation2 + $0x1a0] sm:$0xf]  ;;  %v1485_v33 = vld [vmem:[#allocation2 + $0x1a4] sm:$0xf0]  ;;  %v1133_v35 = vld [vmem:[#allocation2 + $0x90] sm:$0xf]  ;;  %v1206_v37 = vor.u32 %v1469_v31, %v1205_v28  ;;  %v1070_v42 = vor.u32 %v1435_v34, %v1069_v27 }
  0x22   :  { %593 = vmatpush.bf16.msrb.mxu0 %v1102_v57  ;;  %606 = vmatpush.bf16.msrb.mxu1 %v1166_v58  ;;  %v1451_v36 = vld [vmem:[#allocation2 + $0x94] sm:$0xf0]  ;;  %v1270_v38 = vor.u32 %v1485_v33, %v1269_v32  ;;  %v1061_v39 = vld [vmem:[#allocation2] sm:$0xf]  ;;  %v1433_v40 = vld [vmem:[#allocation2 + $0x4] sm:$0xf0] }
  0x23   :  { %v1197_v41 = vld [vmem:[#allocation2 + $0x110] sm:$0xf]  ;;  %v1134_v43 = vor.u32 %v1451_v36, %v1133_v35  ;;  %v1467_v44 = vld [vmem:[#allocation2 + $0x114] sm:$0xf0]  ;;  %v1125_v47 = vld [vmem:[#allocation2 + $0x80] sm:$0xf]  ;;  %v1062_v57 = vor.u32 %v1433_v40, %v1061_v39 }
  0x24   :  { %619 = vmatpush.bf16.msrb.mxu2 %v1230_v1  ;;  %632 = vmatpush.bf16.msrb.mxu3 %v1294_v2  ;;  %v1261_v45 = vld [vmem:[#allocation2 + $0x190] sm:$0xf]  ;;  %v1483_v46 = vld [vmem:[#allocation2 + $0x194] sm:$0xf0]  ;;  %v1449_v48 = vld [vmem:[#allocation2 + $0x84] sm:$0xf0]  ;;  %v1198_v53 = vor.u32 %v1467_v44, %v1197_v41 }
  0x25   :  { %v1446_v49 = vld [vmem:[#allocation2 + $0x74] sm:$0xf]  ;;  %v1119_v50 = vld [vmem:[#allocation2 + $0x78] sm:$0xf0]  ;;  %v1262_v54 = vor.u32 %v1483_v46, %v1261_v45  ;;  %v1189_v55 = vld [vmem:[#allocation2 + $0x100] sm:$0xf]  ;;  %v1126_v58 = vor.u32 %v1449_v48, %v1125_v47 }
  0x26   :  { %594 = vmatpush.bf16.msrb.mxu0 %v1094_v5  ;;  %607 = vmatpush.bf16.msrb.mxu1 %v1158_v6  ;;  %v1462_v51 = vld [vmem:[#allocation2 + $0xf4] sm:$0xf]  ;;  %v1183_v52 = vld [vmem:[#allocation2 + $0xf8] sm:$0xf0]  ;;  %v1465_v56 = vld [vmem:[#allocation2 + $0x104] sm:$0xf0]  ;;  %v1122_v63 = vor.u32 %v1446_v49, %v1119_v50 }
  0x27   :  { %v1444_v59 = vld [vmem:[#allocation2 + $0x64] sm:$0xf]  ;;  %v1253_v60 = vld [vmem:[#allocation2 + $0x180] sm:$0xf]  ;;  %v1481_v61 = vld [vmem:[#allocation2 + $0x184] sm:$0xf0]  ;;  %v1186_v0 = vor.u32 %v1462_v51, %v1183_v52  ;;  %v1190_v7 = vor.u32 %v1465_v56, %v1189_v55 }
  0x28   :  { %620 = vmatpush.bf16.msrb.mxu2 %v1222_v13  ;;  %633 = vmatpush.bf16.msrb.mxu3 %v1286_v14  ;;  %v1478_v62 = vld [vmem:[#allocation2 + $0x174] sm:$0xf]  ;;  %v1247_v1 = vld [vmem:[#allocation2 + $0x178] sm:$0xf0]  ;;  %v1111_v4 = vld [vmem:[#allocation2 + $0x68] sm:$0xf0]  ;;  %v1254_v8 = vor.u32 %v1481_v61, %v1253_v60 }
  0x29   :  { %v1494_v2 = vld [vmem:[#allocation2 + $0x1f4] sm:$0xf]  ;;  %v1311_v3 = vld [vmem:[#allocation2 + $0x1f8] sm:$0xf0]  ;;  %v1460_v5 = vld [vmem:[#allocation2 + $0xe4] sm:$0xf]  ;;  %v1250_v9 = vor.u32 %v1478_v62, %v1247_v1  ;;  %v1114_v11 = vor.u32 %v1444_v59, %v1111_v4 }
  0x2a   :  { %595 = vmatpush.bf16.msrb.mxu0 %v1086_v17  ;;  %608 = vmatpush.bf16.msrb.mxu1 %v1150_v18  ;;  %v1175_v6 = vld [vmem:[#allocation2 + $0xe8] sm:$0xf0]  ;;  %v1314_v10 = vor.u32 %v1494_v2, %v1311_v3  ;;  %v1442_v13 = vld [vmem:[#allocation2 + $0x54] sm:$0xf]  ;;  %v1103_v14 = vld [vmem:[#allocation2 + $0x58] sm:$0xf0] }
  0x2b   :  { %v1178_v12 = vor.u32 %v1460_v5, %v1175_v6  ;;  %v1458_v15 = vld [vmem:[#allocation2 + $0xd4] sm:$0xf]  ;;  %v1106_v16 = vor.u32 %v1442_v13, %v1103_v14  ;;  %v1167_v17 = vld [vmem:[#allocation2 + $0xd8] sm:$0xf0]  ;;  %v1476_v19 = vld [vmem:[#allocation2 + $0x164] sm:$0xf] }
  0x2c   :  { %621 = vmatpush.bf16.msrb.mxu2 %v1214_v25  ;;  %634 = vmatpush.bf16.msrb.mxu3 %v1278_v26  ;;  %v1170_v18 = vor.u32 %v1458_v15, %v1167_v17  ;;  %v1239_v20 = vld [vmem:[#allocation2 + $0x168] sm:$0xf0]  ;;  %v1492_v22 = vld [vmem:[#allocation2 + $0x1e4] sm:$0xf]  ;;  %v1474_v31 = vld [vmem:[#allocation2 + $0x154] sm:$0xf] }
  0x2d   :  { %v1242_v21 = vor.u32 %v1476_v19, %v1239_v20  ;;  %v1303_v23 = vld [vmem:[#allocation2 + $0x1e8] sm:$0xf0]  ;;  %v1440_v25 = vld [vmem:[#allocation2 + $0x44] sm:$0xf]  ;;  %v1231_v32 = vld [vmem:[#allocation2 + $0x158] sm:$0xf0] }
  0x2e   :  { %596 = vmatpush.bf16.msrb.mxu0 %v1078_v29  ;;  %609 = vmatpush.bf16.msrb.mxu1 %v1142_v30  ;;  %v1306_v24 = vor.u32 %v1492_v22, %v1303_v23  ;;  %v1095_v26 = vld [vmem:[#allocation2 + $0x48] sm:$0xf0]  ;;  %v1456_v27 = vld [vmem:[#allocation2 + $0xc4] sm:$0xf]  ;;  %v1490_v33 = vld [vmem:[#allocation2 + $0x1d4] sm:$0xf]  ;;  %v1234_v34 = vor.u32 %v1474_v31, %v1231_v32 }
  0x2f   :  { %v1098_v28 = vor.u32 %v1440_v25, %v1095_v26  ;;  %v1159_v29 = vld [vmem:[#allocation2 + $0xc8] sm:$0xf0]  ;;  %v1295_v35 = vld [vmem:[#allocation2 + $0x1d8] sm:$0xf0]  ;;  %v1454_v40 = vld [vmem:[#allocation2 + $0xb4] sm:$0xf] }
  0x30   :  { %622 = vmatpush.bf16.msrb.mxu2 %v1206_v37  ;;  %635 = vmatpush.bf16.msrb.mxu3 %v1270_v38  ;;  %v1162_v30 = vor.u32 %v1456_v27, %v1159_v29  ;;  %v1298_v36 = vor.u32 %v1490_v33, %v1295_v35  ;;  %v1438_v37 = vld [vmem:[#allocation2 + $0x34] sm:$0xf]  ;;  %v1087_v38 = vld [vmem:[#allocation2 + $0x38] sm:$0xf0]  ;;  %v1223_v44 = vld [vmem:[#allocation2 + $0x148] sm:$0xf0] }
  0x31   :  { %v1090_v39 = vor.u32 %v1438_v37, %v1087_v38  ;;  %v1151_v41 = vld [vmem:[#allocation2 + $0xb8] sm:$0xf0]  ;;  %v1488_v45 = vld [vmem:[#allocation2 + $0x1c4] sm:$0xf]  ;;  %v1287_v47 = vld [vmem:[#allocation2 + $0x1c8] sm:$0xf0] }
  0x32   :  { %597 = vmatpush.bf16.msrb.mxu0 %v1070_v42  ;;  %610 = vmatpush.bf16.msrb.mxu1 %v1134_v43  ;;  %v1154_v42 = vor.u32 %v1454_v40, %v1151_v41  ;;  %v1472_v43 = vld [vmem:[#allocation2 + $0x144] sm:$0xf]  ;;  %v1290_v48 = vor.u32 %v1488_v45, %v1287_v47  ;;  %v1079_v50 = vld [vmem:[#allocation2 + $0x28] sm:$0xf0]  ;;  %v1470_v55 = vld [vmem:[#allocation2 + $0x134] sm:$0xf] }
  0x33   :  { %v1226_v46 = vor.u32 %v1472_v43, %v1223_v44  ;;  %v1436_v49 = vld [vmem:[#allocation2 + $0x24] sm:$0xf]  ;;  %v1215_v56 = vld [vmem:[#allocation2 + $0x138] sm:$0xf0]  ;;  %v1434_v61 = vld [vmem:[#allocation2 + $0x14] sm:$0xf] }
  0x34   :  { %623 = vmatpush.bf16.msrb.mxu2 %v1198_v53  ;;  %636 = vmatpush.bf16.msrb.mxu3 %v1262_v54  ;;  %v1452_v51 = vld [vmem:[#allocation2 + $0xa4] sm:$0xf]  ;;  %v1082_v52 = vor.u32 %v1436_v49, %v1079_v50  ;;  %v1143_v53 = vld [vmem:[#allocation2 + $0xa8] sm:$0xf0]  ;;  %v1279_v59 = vld [vmem:[#allocation2 + $0x1b8] sm:$0xf0] }
  0x35   :  { %v1146_v54 = vor.u32 %v1452_v51, %v1143_v53  ;;  %v1071_v62 = vld [vmem:[#allocation2 + $0x18] sm:$0xf0]  ;;  %v1468_v2 = vld [vmem:[#allocation2 + $0x124] sm:$0xf]  ;;  %v1207_v3 = vld [vmem:[#allocation2 + $0x128] sm:$0xf0] }
  0x36   :  { %598 = vmatpush.bf16.msrb.mxu0 %v1062_v57  ;;  %611 = vmatpush.bf16.msrb.mxu1 %v1126_v58  ;;  %v1486_v57 = vld [vmem:[#allocation2 + $0x1b4] sm:$0xf]  ;;  %v1218_v58 = vor.u32 %v1470_v55, %v1215_v56  ;;  %v1135_v1 = vld [vmem:[#allocation2 + $0x98] sm:$0xf0]  ;;  %v1210_v5 = vor.u32 %v1468_v2, %v1207_v3  ;;  %v1484_v6 = vld [vmem:[#allocation2 + $0x1a4] sm:$0xf] }
  0x37   :  { %v1282_v60 = vor.u32 %v1486_v57, %v1279_v59  ;;  %v1466_v15 = vld [vmem:[#allocation2 + $0x114] sm:$0xf]  ;;  %v1263_v19 = vld [vmem:[#allocation2 + $0x198] sm:$0xf0]  ;;  %v1191_v22 = vld [vmem:[#allocation2 + $0x108] sm:$0xf0] }
  0x38   :  { %624 = vmatpush.bf16.msrb.mxu2 %v1190_v7  ;;  %637 = vmatpush.bf16.msrb.mxu3 %v1254_v8  ;;  %v1271_v7 = vld [vmem:[#allocation2 + $0x1a8] sm:$0xf0]  ;;  %v1432_v8 = vld [vmem:[#allocation2 + $0x4] sm:$0xf]  ;;  %v1482_v17 = vld [vmem:[#allocation2 + $0x194] sm:$0xf] }
  0x39   :  { %v1266_v20 = vor.u32 %v1482_v17, %v1263_v19  ;;  %v1480_v23 = vld [vmem:[#allocation2 + $0x184] sm:$0xf]  ;;  %v1255_v25 = vld [vmem:[#allocation2 + $0x188] sm:$0xf0]  ;;  %v78_v27 = vld [vmem:[%s1772_s2] sm:$0xf] }
  0x3a   :  { %643 = vmatpush.bf16.msra.mxu0 %v1122_v63  ;;  %656 = vmatpush.bf16.msra.mxu1 %v1186_v0  ;;  %v1450_v63 = vld [vmem:[#allocation2 + $0x94] sm:$0xf]  ;;  %v1074_v0 = vor.u32 %v1434_v61, %v1071_v62  ;;  %v1258_v26 = vor.u32 %v1480_v23, %v1255_v25  ;;  %v81_v29 = vperm.slane %v78_v27, 1  ;;  %v83_v37 = vperm.slane %v78_v27, 3  ;;  %v1503_v38 = vld [vmem:[#allocation4 + $0x38] sm:$0xff]  ;;  %v1500_v55 = vld [vmem:[#allocation4 + $0x20] sm:$0xff] }
  0x3b   :  { %v1138_v4 = vor.u32 %v1450_v63, %v1135_v1  ;;  %v1502_v47 = vld [vmem:[#allocation4 + $0x30] sm:$0xff]  ;;  %v1499_v56 = vld [vmem:[#allocation4 + $0x18] sm:$0xff]  ;;  %v1509_v61 = vld [vmem:[#allocation4 + $0x68] sm:$0xff]  ;;  %vm985_vm2 = vcmask 523264   ;;  %vm1031_vm3 = vcmask 15360  }
  0x3c   :  { %669 = vmatpush.bf16.msra.mxu2 %v1250_v9  ;;  %682 = vmatpush.bf16.msra.mxu3 %v1314_v10  ;;  %v1274_v9 = vor.u32 %v1484_v6, %v1271_v7  ;;  %v1063_v10 = vld [vmem:[#allocation2 + $0x8] sm:$0xf0]  ;;  %v1511_v57 = vld [vmem:[#allocation4 + $0x78] sm:$0xff]  ;;  %v1510_v59 = vld [vmem:[#allocation4 + $0x70] sm:$0xff] }
  0x3d   :  { %v1066_v13 = vor.u32 %v1432_v8, %v1063_v10  ;;  %v1496_v62 = vld [vmem:[#allocation4] sm:$0xff]  ;;  %v1506_v1 = vld [vmem:[#allocation4 + $0x50] sm:$0xff]  ;;  %v1505_v2 = vld [vmem:[#allocation4 + $0x48] sm:$0xff] }
  0x3e   :  { %644 = vmatpush.bf16.msra.mxu0 %v1114_v11  ;;  %657 = vmatpush.bf16.msra.mxu1 %v1178_v12  ;;  %v1448_v11 = vld [vmem:[#allocation2 + $0x84] sm:$0xf]  ;;  %v1127_v12 = vld [vmem:[#allocation2 + $0x88] sm:$0xf0]  ;;  %v265_v3 = vld [vmem:[%s1774_s4] sm:$0x3] }
  0x3f   :  { %v1130_v14 = vor.u32 %v1448_v11, %v1127_v12  ;;  %v1508_v63 = vld [vmem:[#allocation4 + $0x60] sm:$0xff]  ;;  %v267_v7 = vperm.slane %v265_v3, 0 }
  0x40   :  { %670 = vmatpush.bf16.msra.mxu2 %v1242_v21  ;;  %683 = vmatpush.bf16.msra.mxu3 %v1306_v24  ;;  %v1464_v21 = vld [vmem:[#allocation2 + $0x104] sm:$0xf] }
  0x41   :  { %v1194_v24 = vor.u32 %v1464_v21, %v1191_v22  ;;  %v1504_v6 = vld [vmem:[#allocation4 + $0x40] sm:$0xff] }
  0x42   :  { %645 = vmatpush.bf16.msra.mxu0 %v1106_v16  ;;  %658 = vmatpush.bf16.msra.mxu1 %v1170_v18  ;;  %v1199_v16 = vld [vmem:[#allocation2 + $0x118] sm:$0xf0] }
  0x43   :  { %v1202_v18 = vor.u32 %v1466_v15, %v1199_v16 }
  0x44   :  { %671 = vmatpush.bf16.msra.mxu2 %v1234_v34  ;;  %684 = vmatpush.bf16.msra.mxu3 %v1298_v36  ;;  %v82_v36 = vperm.slane %v78_v27, 2 }
  0x46   :  { %646 = vmatpush.bf16.msra.mxu0 %v1098_v28  ;;  %659 = vmatpush.bf16.msra.mxu1 %v1162_v30  ;;  %v80_v28 = vperm.slane %v78_v27, 0 }
  0x48   :  { %672 = vmatpush.bf16.msra.mxu2 %v1226_v46  ;;  %685 = vmatpush.bf16.msra.mxu3 %v1290_v48 }
  0x4a   :  { %647 = vmatpush.bf16.msra.mxu0 %v1090_v39  ;;  %660 = vmatpush.bf16.msra.mxu1 %v1154_v42 }
  0x4c   :  { %673 = vmatpush.bf16.msra.mxu2 %v1218_v58  ;;  %686 = vmatpush.bf16.msra.mxu3 %v1282_v60  ;;  %v1498_v58 = vld [vmem:[#allocation4 + $0x10] sm:$0xff]  ;;  %v1497_v60 = vld [vmem:[#allocation4 + $0x8] sm:$0xff] }
  0x4e   :  { %648 = vmatpush.bf16.msra.mxu0 %v1082_v52  ;;  %661 = vmatpush.bf16.msra.mxu1 %v1146_v54  ;;  %v1501_v52 = vld [vmem:[#allocation4 + $0x28] sm:$0xff] }
  0x50   :  { %674 = vmatpush.bf16.msra.mxu2 %v1210_v5  ;;  %687 = vmatpush.bf16.msra.mxu3 %v1274_v9 }
  0x52   :  { %649 = vmatpush.bf16.msra.mxu0 %v1074_v0  ;;  %662 = vmatpush.bf16.msra.mxu1 %v1138_v4  ;;  %v1507_v0 = vld [vmem:[#allocation4 + $0x58] sm:$0xff] }
  0x54   :  { %675 = vmatpush.bf16.msra.mxu2 %v1202_v18  ;;  %688 = vmatpush.bf16.msra.mxu3 %v1266_v20  ;;  %v268_v20 = vperm.slane %v265_v3, 1 }
  0x56   :  { %650 = vmatpush.bf16.msra.mxu0 %v1066_v13  ;;  %663 = vmatpush.bf16.msra.mxu1 %v1130_v14 }
  0x58   :  { %676 = vmatpush.bf16.msra.mxu2 %v1194_v24  ;;  %689 = vmatpush.bf16.msra.mxu3 %v1258_v26 }
  0x96   :  { %v144_v30 = vpop.f32.mrf.mxu0  ;;  %v157_v31 = vpop.f32.mrf.mxu1 }
  0x97   :  { %v145_v32 = vadd.f32 %v144_v30, %v80_v28  ;;  %v158_v33 = vadd.f32 %v157_v31, %v81_v29 }
  0x99   :  { %v193_v34 = vmax.f32 %v145_v32, 0.0  ;;  %v194_v35 = vmax.f32 %v158_v33, 0.0 }
  0x9b   :  { %v197_v39 = vpack.c.bf16 %v193_v34, %v193_v34  ;;  %v198_v40 = vpack.c.bf16 %v194_v35, %v194_v35  ;;  %v1519_v35 = vld [vmem:[%s1777_s7 + $0x38] sm:$0xff] }
  0x9d   :  { %599 = vmatmul.bf16.vlgmr.msrb.gmra.mxu0 %v197_v39  ;;  %612 = vmatmul.bf16.vlgmr.msrb.gmra.mxu1 %v198_v40 }
  0x9e   :  { %v170_v41 = vpop.f32.mrf.mxu2  ;;  %v183_v42 = vpop.f32.mrf.mxu3  ;;  %834 = vmatpush.bf16.msrb.mxu0 %v1503_v38  ;;  %847 = vmatpush.bf16.msrb.mxu1 %v1511_v57  ;;  %v1516_v38 = vld [vmem:[%s1777_s7 + $0x20] sm:$0xff] }
  0x9f   :  { %v171_v43 = vadd.f32 %v170_v41, %v82_v36  ;;  %v184_v44 = vadd.f32 %v183_v42, %v83_v37  ;;  %v146_v45 = vpop.f32.mrf.mxu0  ;;  %v159_v46 = vpop.f32.mrf.mxu1  ;;  %v1518_v36 = vld [vmem:[%s1777_s7 + $0x30] sm:$0xff]  ;;  %v1517_v37 = vld [vmem:[%s1777_s7 + $0x28] sm:$0xff]  ;;  %v1512_v42 = vld [vmem:[%s1777_s7] sm:$0xff] }
  0xa0   :  { %v1513_v41 = vld [vmem:[%s1777_s7 + $0x8] sm:$0xff]  ;;  %v1535_v45 = vld [vmem:[%s1776_s6] ss:$0 sm:$0xff] }
  0xa1   :  { %v195_v48 = vmax.f32 %v171_v43, 0.0  ;;  %v196_v49 = vmax.f32 %v184_v44, 0.0  ;;  %v1520_v57 = vld [vmem:[%s1779_s9] sm:$0xff] }
  0xa2   :  { %835 = vmatpush.bf16.msrb.mxu0 %v1502_v47  ;;  %848 = vmatpush.bf16.msrb.mxu1 %v1510_v59 }
  0xa3   :  { %v199_v50 = vpack.c.bf16 %v195_v48, %v195_v48  ;;  %v200_v51 = vpack.c.bf16 %v196_v49, %v196_v49 }
  0xa5   :  { %625 = vmatmul.bf16.vlgmr.msrb.gmra.mxu2 %v199_v50  ;;  %638 = vmatmul.bf16.vlgmr.msrb.gmra.mxu3 %v200_v51 }
  0xa6   :  { %v172_v53 = vpop.f32.mrf.mxu2  ;;  %v185_v54 = vpop.f32.mrf.mxu3  ;;  %836 = vmatpush.bf16.msrb.mxu0 %v1501_v52  ;;  %849 = vmatpush.bf16.msrb.mxu1 %v1509_v61 }
  0xa7   :  { %932 = vmatpush.bf16.msrb.mxu2 %v1519_v35  ;;  %v1523_v54 = vld [vmem:[%s1779_s9 + $0x18] sm:$0xff] }
  0xa8   :  { %993 = vmatpush.bf16.msrb.mxu3 %v1523_v54 }
  0xaa   :  { %837 = vmatpush.bf16.msrb.mxu0 %v1500_v55  ;;  %850 = vmatpush.bf16.msrb.mxu1 %v1508_v63  ;;  %v1522_v55 = vld [vmem:[%s1779_s9 + $0x10] sm:$0xff] }
  0xab   :  { %933 = vmatpush.bf16.msrb.mxu2 %v1518_v36 }
  0xac   :  { %994 = vmatpush.bf16.msrb.mxu3 %v1522_v55 }
  0xad   :  { %651 = vmatmul.bf16.vlgmr.msra.gmra.mxu0 %v197_v39  ;;  %664 = vmatmul.bf16.vlgmr.msra.gmra.mxu1 %v198_v40  ;;  %v1515_v39 = vld [vmem:[%s1777_s7 + $0x18] sm:$0xff]  ;;  %v1514_v40 = vld [vmem:[%s1777_s7 + $0x10] sm:$0xff] }
  0xae   :  { %838 = vmatpush.bf16.msrb.mxu0 %v1499_v56  ;;  %851 = vmatpush.bf16.msrb.mxu1 %v1507_v0  ;;  %v1521_v56 = vld [vmem:[%s1779_s9 + $0x8] sm:$0xff]  ;;  %s1606_s9 = smov 127  }
  0xaf   :  { %934 = vmatpush.bf16.msrb.mxu2 %v1517_v37 }
  0xb0   :  { %995 = vmatpush.bf16.msrb.mxu3 %v1521_v56 }
  0xb2   :  { %839 = vmatpush.bf16.msrb.mxu0 %v1498_v58  ;;  %852 = vmatpush.bf16.msrb.mxu1 %v1506_v1  ;;  %v1536_v58 = vld [vmem:[%s1778_s8] ss:$0 sm:$0xff]  ;;  %s1607_s8 = smov 1  }
  0xb3   :  { %935 = vmatpush.bf16.msrb.mxu2 %v1516_v38 }
  0xb4   :  { %996 = vmatpush.bf16.msrb.mxu3 %v1520_v57 }
  0xb5   :  { %677 = vmatmul.bf16.vlgmr.msra.gmra.mxu2 %v199_v50  ;;  %690 = vmatmul.bf16.vlgmr.msra.gmra.mxu3 %v200_v51 }
  0xb6   :  { %840 = vmatpush.bf16.msrb.mxu0 %v1497_v60  ;;  %853 = vmatpush.bf16.msrb.mxu1 %v1505_v2  ;;  %v1537_v2 = vld [vmem:[%s1780_s10] ss:$0 sm:$0xff] }
  0xb7   :  { %936 = vmatpush.bf16.msrb.mxu2 %v1515_v39 }
  0xba   :  { %841 = vmatpush.bf16.msrb.mxu0 %v1496_v62  ;;  %854 = vmatpush.bf16.msrb.mxu1 %v1504_v6 }
  0xbb   :  { %937 = vmatpush.bf16.msrb.mxu2 %v1514_v40 }
  0xbf   :  { %938 = vmatpush.bf16.msrb.mxu2 %v1513_v41 }
  0xc3   :  { %939 = vmatpush.bf16.msrb.mxu2 %v1512_v42 }
 0x11a   :  { %v600_v4 = vpop.f32.mrf.mxu0  ;;  %v613_v5 = vpop.f32.mrf.mxu1 }
 0x11b   :  { %v601_v8 = vadd.f32 %v600_v4, %v267_v7 }
 0x11d   :  { %v614_v11 = vadd.f32 %v613_v5, %v601_v8 }
 0x122   :  { %v602_v9 = vpop.f32.mrf.mxu0  ;;  %v615_v10 = vpop.f32.mrf.mxu1 }
 0x128   :  { %v626_v12 = vpop.f32.mrf.mxu2  ;;  %v639_v13 = vpop.f32.mrf.mxu3 }
 0x129   :  { %v627_v14 = vadd.f32 %v626_v12, %v614_v11  ;;  %v1608_v12 = vmov 0  }
 0x12a   :  { %v652_v16 = vpop.f32.mrf.mxu0  ;;  %v665_v17 = vpop.f32.mrf.mxu1  ;;  %1533 = vset.pattern.permute.xlu1 %v1608_v12  ;;  %1534 = vset.pattern.permute.xlu0 %v1608_v12 }
 0x12b   :  { %v640_v15 = vadd.f32 %v639_v13, %v627_v14  ;;  %v653_v23 = vadd.f32 %v652_v16, %v268_v20 }
 0x12d   :  { %v698_v18 = vmax.f32 %v640_v15, 0.0  ;;  %v666_v26 = vadd.f32 %v665_v17, %v653_v23 }
 0x12f   :  { %v700_v19 = vpack.c.bf16 %v698_v18, %v698_v18 }
 0x130   :  { %v628_v21 = vpop.f32.mrf.mxu2  ;;  %v641_v22 = vpop.f32.mrf.mxu3 }
 0x131   :  { %842 = vmatmul.bf16.vlgmr.msrb.gmra.mxu0 %v700_v19 }
 0x132   :  { %v654_v24 = vpop.f32.mrf.mxu0  ;;  %v667_v25 = vpop.f32.mrf.mxu1 }
 0x138   :  { %v678_v27 = vpop.f32.mrf.mxu2  ;;  %v691_v28 = vpop.f32.mrf.mxu3 }
 0x139   :  { %v679_v29 = vadd.f32 %v678_v27, %v666_v26 }
 0x13b   :  { %v692_v30 = vadd.f32 %v691_v28, %v679_v29 }
 0x13d   :  { %v699_v31 = vmax.f32 %v692_v30, 0.0 }
 0x13f   :  { %v701_v32 = vpack.c.bf16 %v699_v31, %v699_v31 }
 0x140   :  { %v680_v33 = vpop.f32.mrf.mxu2  ;;  %v693_v34 = vpop.f32.mrf.mxu3 }
 0x141   :  { %855 = vmatmul.bf16.vlgmr.msrb.gmra.mxu1 %v701_v32 }
 0x1ae   :  { %v843_v43 = vpop.f32.mrf.mxu0 }
 0x1af   :  { %v844_v46 = vadd.f32 %v1535_v45, %v843_v43 }
 0x1b6   :  { %v845_v44 = vpop.f32.mrf.mxu0 }
 0x1be   :  { %v856_v47 = vpop.f32.mrf.mxu1 }
 0x1bf   :  { %v857_v48 = vadd.f32 %v856_v47, %v844_v46 }
 0x1c1   :  { %v860_v49 = vpack.c.bf16 %v857_v48, %v857_v48 }
 0x1c3   :  { %v861_v50 = vunpack.c.l.bf16 %v860_v49 }
 0x1c5   :  { %1538 = vtanh.f32 %v861_v50 }
 0x1c6   :  { %v858_v51 = vpop.f32.mrf.mxu1 }
 0x1cb   :  { %v1539_v52 = vpop.eup %1538 }
 0x1cc   :  { %v863_v53 = vpack.c.bf16 %v1539_v52, %v1539_v52 }
 0x1ce   :  { %940 = vmatmul.bf16.vlgmr.msrb.gmra.mxu2 %v863_v53 }
 0x251   :  { %v941_v59 = vpop.f32.mrf.mxu2 }
 0x252   :  { %v942_v60 = vadd.f32 %v1536_v58, %v941_v59 }
 0x254   :  { %v945_v61 = vpack.c.bf16 %v942_v60, %v942_v60 }
 0x256   :  { %v946_v62 = vunpack.c.l.bf16 %v945_v61 }
 0x258   :  { %1540 = vtanh.f32 %v946_v62 }
 0x259   :  { %v943_v63 = vpop.f32.mrf.mxu2 }
 0x25e   :  { %v1541_v0 = vpop.eup %1540 }
 0x25f   :  { %v948_v1 = vpack.c.bf16 %v1541_v0, %v1541_v0 }
 0x261   :  { %1427 = vmatmul.msk.bf16.vlgmr.msrb.gmra.mxu3 %vm985_vm2, %v948_v1 }
 0x2e4   :  { %v998_v3 = vpop.f32.mrf.mxu3 }
 0x2e5   :  { %v999_v4 = vadd.f32 %v1537_v2, %v998_v3 }
 0x2e7   :  { %1003 = vrot.lane.b32.xlu0 %v999_v4, %s1606_s9 }
 0x2ec   :  { %v1000_v5 = vpop.f32.mrf.mxu3 }
 0x359   :  { %v1004_v6 = vpop.permute.xlu0 %1003 }
 0x35a   :  { %v1006_v7 = vmax.f32 %v999_v4, %v1004_v6 }
 0x35c   :  { %1011 = vrot.lane.b32.xlu0 %v1006_v7, %s1607_s8  ;;  %v1007_v13 = vsub.f32 %v999_v4, %v1006_v7 }
 0x35e   :  { %v1008_v14 = vmul.f32 1.442695, %v1007_v13 }
 0x3ce   :  { %v1012_v8 = vpop.permute.xlu0 %1011 }
 0x3cf   :  { %v1014_v9 = vsub.f32 %v999_v4, %v1012_v8 }
 0x3d1   :  { %v1015_v10 = vmul.f32 1.442695, %v1014_v9 }
 0x3d3   :  { %1542 = vpow2.f32 %v1015_v10 }
 0x3d4   :  { %1544 = vpow2.f32 %v1008_v14 }
 0x3d9   :  { %v1543_v11 = vpop.eup %1542 }
 0x3da   :  { %1018 = vrot.lane.b32.xlu1 %v1543_v11, %s1606_s9  ;;  %v1545_v15 = vpop.eup %1544 }
 0x44c   :  { %v1019_v16 = vpop.permute.xlu1 %1018 }
 0x44d   :  { %v1021_v17 = vadd.f32 %v1545_v15, %v1019_v16 }
 0x44f   :  { %1546 = vlog2.f32 %v1021_v17 }
 0x455   :  { %v1547_v18 = vpop.eup %1546 }
 0x456   :  { %v1023_v19 = vmul.f32 0.6931472, %v1547_v18 }
 0x458   :  { %v1024_v20 = vadd.f32 %v1023_v19, %v1006_v7 }
 0x45a   :  { %1027 = vperm.xlu1 %1533, %v1024_v20  }
 0x4cc   :  { %v1028_v21 = vpop.permute.xlu1 %1027 }
 0x4cd   :  { %v1030_v22 = vsub.f32 %v999_v4, %v1028_v21 }
 0x4cf   :  { %1032 = vst.msk [vmem:[%s1781_s11] sm:$0xff] %vm1031_vm3, %v1030_v22 }
 0x4d0   :  { %1037 = vsyncpa [#allocation3], 1 }
 0x4d1   :  { %1038 = vsyncpa [#allocation5], 1 }

</bundles_post_ra>
